<compile_context>
chip_gen: v7x
topology: tpu7x:2x2x1
jax: 0.10.0
libtpu: 0.0.40
codegen_flags: <defaults>
</compile_context>

<pallas_src>
import functools

import jax
import jax.numpy as jnp
from jax.experimental import pallas as pl
from jax.experimental.pallas import tpu as pltpu


# ----------------------------------------------------------------------------
# Pallas kernel
# ----------------------------------------------------------------------------
def _grad_kernel(x_ref, o_ref, *, hh):
    """Fused Scharr-style gradient magnitude for one (batch, channel-group) tile.

    x_ref: (1, ct*hh, W) input block in VMEM  (ct channels of height hh, stacked)
    o_ref: (1, ct*hh, W) output block in VMEM
    hh:    per-channel image height H (rows are grouped in planes of hh rows)
    """
    x = x_ref[0].astype(jnp.float32)          # (R, W) with R = ct * hh
    R, W = x.shape

    # Per-element row-within-plane / column indices for SAME-padding masks.
    row = jax.lax.broadcasted_iota(jnp.int32, (R, W), 0) % hh
    col = jax.lax.broadcasted_iota(jnp.int32, (R, W), 1)

    def shift_w(a, d):
        # value at column x+d (zero outside [0, W)); lane rotate on the XLU.
        r = pltpu.roll(a, shift=(-d) % W, axis=1)
        if d > 0:
            return jnp.where(col >= W - d, 0.0, r)
        return jnp.where(col < -d, 0.0, r)

    def shift_h(a, d):
        # value at row y+d within each hh-row plane (zero outside the plane);
        # sublane rotate on the XLU.  The row%hh mask also kills the values
        # that wrap across channel-plane boundaries.
        r = pltpu.roll(a, shift=(-d) % R, axis=0)
        if d > 0:
            return jnp.where(row >= hh - d, 0.0, r)
        return jnp.where(row < -d, 0.0, r)

    # Separable form:
    #   kernel_v = [[-3,-10,-3],[0,0,0],[3,10,3]]  ->  g_v = Sh(y+1) - Sh(y-1)
    #     with Sh(y,x) = 3*x(y,x-1) + 10*x(y,x) + 3*x(y,x+1)
    sh = 3.0 * (shift_w(x, -1) + shift_w(x, 1)) + 10.0 * x
    g_v = shift_h(sh, 1) - shift_h(sh, -1)

    #   kernel_h = [[-3,0,3],[-10,0,10],[-3,0,3]]  ->  g_h = Sv(x+1) - Sv(x-1)
    #     with Sv(y,x) = 3*x(y-1,x) + 10*x(y,x) + 3*x(y+1,x)
    sv = 3.0 * (shift_h(x, -1) + shift_h(x, 1)) + 10.0 * x
    g_h = shift_w(sv, 1) - shift_w(sv, -1)

    o_ref[0] = jnp.sqrt(g_v * g_v + g_h * g_h + 1e-6).astype(o_ref.dtype)


# ----------------------------------------------------------------------------
# Wrapper
# ----------------------------------------------------------------------------
def _pick_channel_tile(C, H, W, itemsize, target_bytes=1 << 20):
    """Largest channel-group dividing C with ~<= target_bytes per block and a
    (ct*H) row count that satisfies the sublane-divisibility rule."""
    budget = max(1, target_bytes // max(H * W * itemsize, 1))
    for ct in range(min(C, budget), 0, -1):
        if C % ct == 0 and ((ct * H) % 8 == 0 or ct == C):
            return ct
    return C  # fallback: full-channel block (always a legal full-extent block)


def get_gradient_nopadding(x):
    """x: (B, C, H, W) NCHW float tensor -> (B, C, H, W) gradient magnitude."""
    B, C, H, W = x.shape
    itemsize = jnp.dtype(x.dtype).itemsize
    ct = _pick_channel_tile(C, H, W, itemsize)

    # Merge (C, H) -> rows: free contiguous reshape; the kernel then works on
    # lane-dense 2-D (rows, W) tiles (W = full lane extent, no W+2 slab).
    x_rows = x.reshape(B, C * H, W)

    kernel = functools.partial(_grad_kernel, hh=H)
    out_rows = pl.pallas_call(
        kernel,
        out_shape=jax.ShapeDtypeStruct((B, C * H, W), x.dtype),
        grid_spec=pltpu.PrefetchScalarGridSpec(
            num_scalar_prefetch=0,
            grid=(B, C // ct),
            in_specs=[
                pl.BlockSpec((1, ct * H, W), lambda b, c: (b, c, 0)),
            ],
            out_specs=pl.BlockSpec((1, ct * H, W), lambda b, c: (b, c, 0)),
        ),
        compiler_params=pltpu.CompilerParams(
            dimension_semantics=("parallel", "parallel")),
        cost_estimate=pl.CostEstimate(
            flops=20 * B * C * H * W,
            transcendentals=B * C * H * W,
            bytes_accessed=2 * B * C * H * W * itemsize),
    )(x_rows)
    return out_rows.reshape(B, C, H, W)


# ----------------------------------------------------------------------------
# Pure-JAX reference (mirrors PyTorch F.conv2d cross-correlation, padding=1)
# ----------------------------------------------------------------------------
def get_gradient_ref(x):
    B, C, H, W = x.shape
    kv = jnp.array([[-3., -10., -3.], [0., 0., 0.], [3., 10., 3.]], jnp.float32)
    kh = jnp.array([[-3., 0., 3.], [-10., 0., 10.], [-3., 0., 3.]], jnp.float32)

    def conv(img, k):
        return jax.lax.conv_general_dilated(
            img, k.reshape(1, 1, 3, 3), window_strides=(1, 1),
            padding=((1, 1), (1, 1)),
            dimension_numbers=("NCHW", "OIHW", "NCHW"))

    xi = x.reshape(B * C, 1, H, W).astype(jnp.float32)
    gv = conv(xi, kv)
    gh = conv(xi, kh)
    out = jnp.sqrt(gv * gv + gh * gh + 1e-6)
    return out.reshape(B, C, H, W).astype(x.dtype)


# ----------------------------------------------------------------------------
if __name__ == "__main__":
    B, C, H, W = 2, 4, 16, 16

    key = jax.random.PRNGKey(0)
    x = jax.random.normal(key, (B, C, H, W), jnp.float32)

    out = jax.jit(get_gradient_nopadding)(x)
    out = jax.block_until_ready(out)

    ref = get_gradient_ref(x)
    assert out.shape == (B, C, H, W)
    err = float(jnp.max(jnp.abs(out - ref)))
    assert err < 1e-3, f"mismatch vs JAX reference: max abs err = {err}"

    print("KERNEL_OK")
</pallas_src>

<mosaic_0001>
module attributes {stable_mosaic.version = 11 : i64} {
  func.func @_grad_kernel(%arg0: i32, %arg1: i32, %arg2: memref<1x64x16xf32, #tpu.memory_space<vmem>>, %arg3: memref<1x64x16xf32, #tpu.memory_space<vmem>>) attributes {dimension_semantics = [#tpu.dimension_semantics<parallel>, #tpu.dimension_semantics<parallel>], iteration_bounds = array<i64: 2, 1>, scalar_prefetch = 0 : i64, scratch_operands = 0 : i64, tpu.core_type = #tpu.core_type<tc>, window_params = [{transform_indices = @transform_0, window_bounds = array<i64: 1, 64, 16>}, {transform_indices = @transform_1, window_bounds = array<i64: 1, 64, 16>}]} {
    %c0 = arith.constant 0 : index
    %c0_0 = arith.constant 0 : index
    %c0_1 = arith.constant 0 : index
    %0 = vector.load %arg2[%c0, %c0_0, %c0_1] : memref<1x64x16xf32, #tpu.memory_space<vmem>>, vector<1x64x16xf32>
    %1 = vector.shape_cast %0 : vector<1x64x16xf32> to vector<64x16xf32>
    %2 = tpu.iota {dimensions = array<i32: 0>} : vector<64x16xi32>
    %c16_i32 = arith.constant 16 : i32
    %c0_i32 = arith.constant 0 : i32
    %3 = arith.cmpi eq, %c16_i32, %c0_i32 : i32
    %c1_i32 = arith.constant 1 : i32
    %4 = arith.select %3, %c1_i32, %c16_i32 : i32
    %5 = vector.broadcast %4 : i32 to vector<64x16xi32>
    %6 = arith.remsi %2, %5 : vector<64x16xi32>
    %c0_i32_2 = arith.constant 0 : i32
    %7 = vector.broadcast %c0_i32_2 : i32 to vector<64x16xi32>
    %8 = arith.cmpi ne, %6, %7 : vector<64x16xi32>
    %c0_i32_3 = arith.constant 0 : i32
    %9 = vector.broadcast %c0_i32_3 : i32 to vector<64x16xi32>
    %10 = arith.cmpi slt, %6, %9 : vector<64x16xi32>
    %c0_i32_4 = arith.constant 0 : i32
    %11 = arith.cmpi slt, %4, %c0_i32_4 : i32
    %12 = vector.broadcast %11 : i1 to vector<64x16xi1>
    %13 = vector.broadcast %12 : vector<64x16xi1> to vector<64x16xi1>
    %14 = arith.xori %10, %13 : vector<64x16xi1>
    %15 = arith.andi %14, %8 : vector<64x16xi1>
    %16 = vector.broadcast %4 : i32 to vector<64x16xi32>
    %17 = arith.addi %6, %16 : vector<64x16xi32>
    %18 = arith.select %15, %17, %6 : vector<64x16xi1>, vector<64x16xi32>
    %19 = tpu.iota {dimensions = array<i32: 1>} : vector<64x16xi32>
    %c1_i32_5 = arith.constant 1 : i32
    %20 = tpu.dynamic_rotate %1 by %c1_i32_5 dim 1 : vector<64x16xf32>, i32 -> vector<64x16xf32>
    %c1_i32_6 = arith.constant 1 : i32
    %21 = vector.broadcast %c1_i32_6 : i32 to vector<64x16xi32>
    %22 = arith.cmpi slt, %19, %21 : vector<64x16xi32>
    %cst = arith.constant 0.000000e+00 : f32
    %23 = vector.broadcast %cst : f32 to vector<64x16xf32>
    %24 = arith.select %22, %23, %20 : vector<64x16xi1>, vector<64x16xf32>
    %c15_i32 = arith.constant 15 : i32
    %25 = tpu.dynamic_rotate %1 by %c15_i32 dim 1 : vector<64x16xf32>, i32 -> vector<64x16xf32>
    %c15_i32_7 = arith.constant 15 : i32
    %26 = vector.broadcast %c15_i32_7 : i32 to vector<64x16xi32>
    %27 = arith.cmpi sge, %19, %26 : vector<64x16xi32>
    %cst_8 = arith.constant 0.000000e+00 : f32
    %28 = vector.broadcast %cst_8 : f32 to vector<64x16xf32>
    %29 = arith.select %27, %28, %25 : vector<64x16xi1>, vector<64x16xf32>
    %30 = arith.addf %24, %29 : vector<64x16xf32>
    %cst_9 = arith.constant 3.000000e+00 : f32
    %31 = vector.broadcast %cst_9 : f32 to vector<64x16xf32>
    %32 = arith.mulf %31, %30 : vector<64x16xf32>
    %cst_10 = arith.constant 1.000000e+01 : f32
    %33 = vector.broadcast %cst_10 : f32 to vector<64x16xf32>
    %34 = arith.mulf %33, %1 : vector<64x16xf32>
    %35 = arith.addf %32, %34 : vector<64x16xf32>
    %c63_i32 = arith.constant 63 : i32
    %36 = tpu.dynamic_rotate %35 by %c63_i32 dim 0 : vector<64x16xf32>, i32 -> vector<64x16xf32>
    %c15_i32_11 = arith.constant 15 : i32
    %37 = vector.broadcast %c15_i32_11 : i32 to vector<64x16xi32>
    %38 = arith.cmpi sge, %18, %37 : vector<64x16xi32>
    %cst_12 = arith.constant 0.000000e+00 : f32
    %39 = vector.broadcast %cst_12 : f32 to vector<64x16xf32>
    %40 = arith.select %38, %39, %36 : vector<64x16xi1>, vector<64x16xf32>
    %c1_i32_13 = arith.constant 1 : i32
    %41 = tpu.dynamic_rotate %35 by %c1_i32_13 dim 0 : vector<64x16xf32>, i32 -> vector<64x16xf32>
    %c1_i32_14 = arith.constant 1 : i32
    %42 = vector.broadcast %c1_i32_14 : i32 to vector<64x16xi32>
    %43 = arith.cmpi slt, %18, %42 : vector<64x16xi32>
    %cst_15 = arith.constant 0.000000e+00 : f32
    %44 = vector.broadcast %cst_15 : f32 to vector<64x16xf32>
    %45 = arith.select %43, %44, %41 : vector<64x16xi1>, vector<64x16xf32>
    %46 = arith.subf %40, %45 : vector<64x16xf32>
    %c1_i32_16 = arith.constant 1 : i32
    %47 = tpu.dynamic_rotate %1 by %c1_i32_16 dim 0 : vector<64x16xf32>, i32 -> vector<64x16xf32>
    %c1_i32_17 = arith.constant 1 : i32
    %48 = vector.broadcast %c1_i32_17 : i32 to vector<64x16xi32>
    %49 = arith.cmpi slt, %18, %48 : vector<64x16xi32>
    %cst_18 = arith.constant 0.000000e+00 : f32
    %50 = vector.broadcast %cst_18 : f32 to vector<64x16xf32>
    %51 = arith.select %49, %50, %47 : vector<64x16xi1>, vector<64x16xf32>
    %c63_i32_19 = arith.constant 63 : i32
    %52 = tpu.dynamic_rotate %1 by %c63_i32_19 dim 0 : vector<64x16xf32>, i32 -> vector<64x16xf32>
    %c15_i32_20 = arith.constant 15 : i32
    %53 = vector.broadcast %c15_i32_20 : i32 to vector<64x16xi32>
    %54 = arith.cmpi sge, %18, %53 : vector<64x16xi32>
    %cst_21 = arith.constant 0.000000e+00 : f32
    %55 = vector.broadcast %cst_21 : f32 to vector<64x16xf32>
    %56 = arith.select %54, %55, %52 : vector<64x16xi1>, vector<64x16xf32>
    %57 = arith.addf %51, %56 : vector<64x16xf32>
    %cst_22 = arith.constant 3.000000e+00 : f32
    %58 = vector.broadcast %cst_22 : f32 to vector<64x16xf32>
    %59 = arith.mulf %58, %57 : vector<64x16xf32>
    %cst_23 = arith.constant 1.000000e+01 : f32
    %60 = vector.broadcast %cst_23 : f32 to vector<64x16xf32>
    %61 = arith.mulf %60, %1 : vector<64x16xf32>
    %62 = arith.addf %59, %61 : vector<64x16xf32>
    %c15_i32_24 = arith.constant 15 : i32
    %63 = tpu.dynamic_rotate %62 by %c15_i32_24 dim 1 : vector<64x16xf32>, i32 -> vector<64x16xf32>
    %c15_i32_25 = arith.constant 15 : i32
    %64 = vector.broadcast %c15_i32_25 : i32 to vector<64x16xi32>
    %65 = arith.cmpi sge, %19, %64 : vector<64x16xi32>
    %cst_26 = arith.constant 0.000000e+00 : f32
    %66 = vector.broadcast %cst_26 : f32 to vector<64x16xf32>
    %67 = arith.select %65, %66, %63 : vector<64x16xi1>, vector<64x16xf32>
    %c1_i32_27 = arith.constant 1 : i32
    %68 = tpu.dynamic_rotate %62 by %c1_i32_27 dim 1 : vector<64x16xf32>, i32 -> vector<64x16xf32>
    %c1_i32_28 = arith.constant 1 : i32
    %69 = vector.broadcast %c1_i32_28 : i32 to vector<64x16xi32>
    %70 = arith.cmpi slt, %19, %69 : vector<64x16xi32>
    %cst_29 = arith.constant 0.000000e+00 : f32
    %71 = vector.broadcast %cst_29 : f32 to vector<64x16xf32>
    %72 = arith.select %70, %71, %68 : vector<64x16xi1>, vector<64x16xf32>
    %73 = arith.subf %67, %72 : vector<64x16xf32>
    %74 = arith.mulf %46, %46 : vector<64x16xf32>
    %75 = arith.mulf %73, %73 : vector<64x16xf32>
    %76 = arith.addf %74, %75 : vector<64x16xf32>
    %cst_30 = arith.constant 9.99999997E-7 : f32
    %77 = vector.broadcast %cst_30 : f32 to vector<64x16xf32>
    %78 = arith.addf %76, %77 : vector<64x16xf32>
    %79 = math.sqrt %78 : vector<64x16xf32>
    %c0_31 = arith.constant 0 : index
    %c0_32 = arith.constant 0 : index
    %c0_33 = arith.constant 0 : index
    %80 = vector.load %arg3[%c0_31, %c0_32, %c0_33] : memref<1x64x16xf32, #tpu.memory_space<vmem>>, vector<1x64x16xf32>
    %81 = vector.shape_cast %80 : vector<1x64x16xf32> to vector<64x16xf32>
    %82 = vector.shape_cast %79 : vector<64x16xf32> to vector<1x64x16xf32>
    tpu.vector_store %arg3[%c0_31, %c0_32, %c0_33], %82 {strides = array<i32>} : memref<1x64x16xf32, #tpu.memory_space<vmem>>, vector<1x64x16xf32>,
    return
  }
  func.func @transform_0(%arg0: i32, %arg1: i32) -> (i32, i32, i32) {
    %c0_i32 = arith.constant 0 : i32
    %c0_i32_0 = arith.constant 0 : i32
    return %arg0, %arg1, %c0_i32 : i32, i32, i32
  }
  func.func @transform_1(%arg0: i32, %arg1: i32) -> (i32, i32, i32) {
    %c0_i32 = arith.constant 0 : i32
    %c0_i32_0 = arith.constant 0 : i32
    return %arg0, %arg1, %c0_i32 : i32, i32, i32
  }
}

</mosaic_0001>

<bundles_post_ra>
// kernel: get_gradient_nopadding.1
= control target key start
LH: loop header
LB: loop body
LE: loop exit
PB: predicated region body
PF: predicated region fallthrough
CT: control target
= control target key end

     0   :  { %6 = vsyncpa [#allocation3], 0  ;;  %s1868_s0 = inlined_call_operand.hbm [shape: f32[2,64,16], index: 0, kind: input, shape index: {}]   ;;  %s1869_s1 = inlined_call_operand.hbm [shape: f32[2,64,16], index: 1, kind: output, shape index: {}]  }
   0x1   :  { %8 = vsyncpa [#allocation3 + $0x1], 0 }
   0x2   :  { %9 = vsyncpa [#allocation4], 0 }
   0x3   :  { %11 = vsyncpa [#allocation4 + $0x1], 0  ;;  %s1134_s6 = smov 0   ;;  %s1136_s7 = smov 0  }
   0x4   :  { %s1138_s8 = smov 0   ;;  %s1140_s9 = smov 0  }
   0x5   :  { %s1142_s10 = smov 0   ;;  %s1144_s11 = smov 0  }
   0x6 LB: > { %s899_s12 = sadd.s32 4294967295, %s1113_s11   ;;  %s900_s13 = sadd.s32 4294967294, %s1113_s11   ;;  %s1113_s11 = sphi %s1144_s11, %s17_s11   ;;  %s1109_s10 = sphi %s1142_s10, %s1900_s10   ;;  %s1105_s9 = sphi %s1140_s9, %s1899_s9   ;;  %s1101_s8 = sphi %s1138_s8, %s1898_s8   ;;  %s1097_s7 = sphi %s1136_s7, %s1897_s7   ;;  %s1093_s6 = sphi %s1134_s6, %s1896_s6  }
   0x7   : > { %s29_s14 = sadd.s32 1, %s1109_s10  ;;  %s38_s15 = sadd.s32 1, %s1101_s8 }
   0x8   : > { %p31_p0 = scmp.ge.s32.totalorder %s29_s14, 2  ;;  %p45_p1 = scmp.ne.s32.totalorder %s1101_s8, %s1097_s7 }
   0x9   : > { %p46_p2 = scmp.eq.s32.totalorder %s1113_s11, 0  ;;  %p51_p3 = scmp.ne.s32.totalorder %s1097_s7, %s1093_s6 }
   0xa   : > { %s1902_s14 = smov (%p31_p0, %s29_s14), 0  ;;  %p52_p5 = scmp.eq.s32.totalorder %s899_s12, 0 }
   0xb   : > { %p1175_p4 = por %p46_p2, %p45_p1  ;;  %s33_s17 = ssub.s32 %s1109_s10, %s1902_s14 }
   0xc   : > { %p77_p6 = scmp.eq.s32.totalorder %s899_s12, 1  ;;  %p36_p7 = scmp.eq.s32.totalorder %s33_s17, 0 }
   0xd   : > { %p1181_p8 = por %p52_p5, %p51_p3  ;;  %p83_p10 = scmp.eq.s32.totalorder %s900_s13, 1 }
   0xe   : > { %p1185_p9 = por %p77_p6, %p45_p1  ;;  %p928_p13 = scmp.lt.s32.totalorder %s1113_s11, 2 }
   0xf   : > { %s1190_s20 = scalar_select %p36_p7, %s1101_s8, %s38_s15  }
  0x10   : > { %s1873_s19 = scalar_select %p1185_p9, 1, 0 }
  0x11   : > { %p1192_p11 = por %p83_p10, %p51_p3  ;;  %s103_s22 = sand.u32 1, %s1101_s8  }
  0x12   : > { %s903_s23 = sshll.u32 %s103_s22, 6  ;;  %s914_s24 = sshll.u32 %s1109_s10, 10 }
  0x13   : > { %s1874_s21 = scalar_select %p1192_p11, 1, 0 }
  0x14   : > { %s1203_s27 = scalar_lea.hbm %s1868_s0, %s914_s24  ;;  %s107_s28 = scalar_lea.vmem [#allocation2], %s903_s23 }
  0x15   : > { %s116_s29 = sshll.u32 %s107_s28, 4  ;;  %p1209_p0 = pnand %p928_p13, %p1175_p4  ;;  %s1205_s29 = int_to_ptr.vmem [resolvable:$true] %s116_s29 }
  0x16   : > { %s1214_s2 = scalar_lea.sflag [#allocation3], %s103_s22  ;;  %s1001_s3 = scalar_lea.hbm %s1203_s27, 1024 }
  0x17   : > { %p1002_p2 = scmp.ne.s32.totalorder %s1203_s27, %s1001_s3  ;;  %p1003_p3 = pneg %p1209_p0 }
  0x18   : > { %s1006_s12 = scalar_lea.hbm %s1868_s0, 2048  ;;  %p1007_p4 = scmp.lt.u32.totalorder %s1203_s27, %s1868_s0 }
  0x19   : > { %p1004_p5 = pnand %p1003_p3, %p1002_p2  ;;  %p1008_p7 = scmp.lt.u32.totalorder %s1006_s12, %s1001_s3 }
  0x1a   : > { %p1010_p13 = scmp.lt.u32.totalorder %s1001_s3, %s1203_s27 }
  0x1b   : > { %p1005_p6 = pneg %p1004_p5  ;;  %p1009_p10 = por %p1008_p7, %p1007_p4 }
  0x1d   : > { %p1011_p12 = por %p1010_p13, %p1009_p10 }
  0x1f   : > { %p1012_p1 = pnand %p1011_p12, %p1005_p6 }
  0x21   : > { %1015 = shalt.err (!%p1012_p1)
}
  0x22   : > { %s1016_s16 = scalar_lea.vmem %s1205_s29, 1024  ;;  %s1115_s17 = smov [#allocation2]  }
  0x23   : > { %p1017_p2 = scmp.ne.s32.totalorder %s1205_s29, %s1016_s16  ;;  %s1021_s22 = sshll.u32 %s1115_s17, 4  ;;  %s1022_s22 = int_to_ptr.vmem [resolvable:$false] %s1021_s22 }
  0x24   : > { %s1023_s23 = scalar_lea.vmem %s1022_s22, 2048  ;;  %p1024_p9 = scmp.lt.s32.totalorder %s1205_s29, %s1022_s22 }
  0x25   : > { %p1019_p5 = pnand %p1017_p2, %p1003_p3  ;;  %p1025_p4 = scmp.lt.s32.totalorder %s1023_s23, %s1016_s16 }
  0x27   : > { %p1020_p11 = pneg %p1019_p5  ;;  %p1026_p7 = por %p1025_p4, %p1024_p9 }
  0x29   : > { %p1027_p10 = pnand %p1026_p7, %p1020_p11 }
  0x2b   : > { %1030 = shalt.err (!%p1027_p10)
}
  0x2c   : > { %s1116_s24 = smov 128   ;;  %s1117_s25 = smov 8  }
  0x2d   : > { %923 = dma.hbm_to_vmem [thread:$0]  (!%p1209_p0), %s1203_s27, 1024, %s1205_s29, %s1214_s2, %s1116_s24, %s1116_s24, %s1117_s25  }
  0x2e   : > { %p124_p12 = scmp.lt.s32.totalorder %s1113_s11, 3  ;;  %p1876_p1 = scmp.ge.s32.totalorder %s1113_s11, 1 }
  0x30   : > { %p125_p3 = pnand %p1876_p1, %p124_p12 }
  0x31   : > { %s1246_s26 = sand.u32 (!%p125_p3), 1, %s1097_s7  }
  0x32   : > { %128 = sbr.rel (%p125_p3) target bundleno = 510 (0x1fe), region = 24  ;;  %s907_s28 = sshll.u32 (!%p125_p3), %s1246_s26, 6 }
  0x33   : > { %s131_s3 = scalar_lea.sflag (!%p125_p3), [#allocation3], %s1246_s26  ;;  %s1252_s4 = scalar_lea.vmem (!%p125_p3), [#allocation2], %s907_s28 }
  0x39   : > { %1084 = dma.done.wait (%p1181_p8), %s131_s3, 1024  }
  0x3a   : > { %1086 = vsyncadd (%p1181_p8), %s131_s3, 4294966272  ;;  %v163_v0 = vlaneseq  ;;  %v1269_v8 = vld [vmem:[%s1252_s4] sm:$0xff]  ;;  %v1272_v9 = vld [vmem:[%s1252_s4 + $0x10] sm:$0xff]  ;;  %s1118_s18 = smov 16   ;;  %vm270_vm10 = vcmask 1047680   ;;  %s1119_s27 = smov 113  }
  0x3b   : > { %v1275_v10 = vld [vmem:[%s1252_s4 + $0x8] sm:$0xff]  ;;  %271 = vrot.lane.b32.xlu0 %v1269_v8, %s1118_s18  ;;  %277 = vrot.lane.b32.xlu1 %v1272_v9, %s1118_s18  ;;  %v499_v14 = vrot.slane %v1269_v8, 7  ;;  %v523_v15 = vrot.slane %v1269_v8, 1  ;;  %v1295_v18 = vld [vmem:[%s1252_s4 + $0x18] sm:$0xff]  ;;  %v525_v27 = vrot.slane %v1272_v9, 1  ;;  %v501_v30 = vrot.slane %v1272_v9, 7 }
  0x3c   : > { %v1259_v1 = vshrl.u32 %v163_v0, 7  ;;  %v524_v16 = vrot.slane %v1275_v10, 1  ;;  %v1298_v19 = vld [vmem:[%s1252_s4 + $0x38] sm:$0xff]  ;;  %v500_v20 = vrot.slane %v1275_v10, 7  ;;  %v526_v31 = vrot.slane %v1295_v18, 1  ;;  %v1339_v36 = vld [vmem:[%s1252_s4 + $0x20] sm:$0xff] }
  0x3d   : > { %v506_v24 = vrot.slane %v1298_v19, 7  ;;  %v1327_v32 = vmul.f32 10.0, %v1269_v8  ;;  %v1334_v34 = vmul.f32 10.0, %v1275_v10  ;;  %v1342_v37 = vld [vmem:[%s1252_s4 + $0x28] sm:$0xff]  ;;  %v502_v45 = vrot.slane %v1295_v18, 7  ;;  %v1372_v54 = vld [vmem:[%s1252_s4 + $0x30] sm:$0xff] }
  0x3e   : > { %v176_v2 = vand.u32 15, %v1259_v1  ;;  %v165_v3 = vadd.s32 8, %v1259_v1  ;;  %v166_v4 = vadd.s32 16, %v1259_v1  ;;  %v167_v5 = vadd.s32 24, %v1259_v1  ;;  %s1120_s29 = smov 127   ;;  %s1784_s30 = scalar_lea.vmem [#allocation5], %s907_s28 }
  0x3f   : > { %v168_v6 = vadd.s32 32, %v1259_v1  ;;  %vm433_vm0 = vcmp.lt.s32.totalorder %v1259_v1, 7  ;;  %vm466_vm1 = vcmp.lt.s32.totalorder %v1259_v1, 1  ;;  %v1282_v13 = vadd.s32 40, %v1259_v1  ;;  %274 = vrot.lane.b32.xlu0 %v1275_v10, %s1118_s18  ;;  %280 = vrot.lane.b32.xlu1 %v1295_v18, %s1118_s18  ;;  %s915_s2 = sshll.u32 %s1105_s9, 10  ;;  %s812_s5 = sshll.u32 %s1784_s30, 4  ;;  %s1817_s5 = int_to_ptr.vmem [resolvable:$true] %s812_s5 }
  0x40   : > { %v183_v7 = vand.u32 15, %v165_v3  ;;  %vm1277_vm2 = vcmp.lt.s32.totalorder %v176_v2, 1  ;;  %v190_v12 = vand.u32 15, %v166_v4  ;;  %v1292_v17 = vadd.s32 48, %v1259_v1  ;;  %s1815_s15 = scalar_lea.hbm %s1869_s1, %s915_s2  ;;  %s797_s9 = scalar_lea.sflag [#allocation4], %s1246_s26 }
  0x41   : > { %v197_v21 = vand.u32 15, %v167_v5  ;;  %v204_v22 = vand.u32 15, %v168_v6  ;;  %v1302_v23 = vadd.s32 56, %v1259_v1  ;;  %v537_v25 = vsel %vm433_vm0, %v523_v15, %v524_v16  ;;  %s1031_s16 = scalar_lea.vmem %s1817_s5, 1024  ;;  %p1893_p9 = scmp.ne.s32.totalorder %s1873_s19, 0 }
  0x42   : > { %vm1309_vm3 = vcmp.ge.s32.totalorder %v183_v7, 15  ;;  %v513_v28 = vsel %vm466_vm1, %v499_v14, %v500_v20  ;;  %vm1316_vm4 = vcmp.lt.s32.totalorder %v190_v12, 1  ;;  %v514_v33 = vsel %vm466_vm1, %v506_v24, %v499_v14  ;;  %p1032_p8 = scmp.ne.s32.totalorder %s1817_s5, %s1031_s16  ;;  %s1121_s17 = smov [#allocation5]  }
  0x43   : > { %v536_v35 = vsel %vm433_vm0, %v524_v16, %v525_v27  ;;  %v515_v38 = vsel %vm1277_vm2, 0.0, %v514_v33  ;;  %v512_v40 = vsel %vm466_vm1, %v500_v20, %v501_v30  ;;  %v535_v41 = vsel %vm433_vm0, %v525_v27, %v526_v31  ;;  %283 = vrot.lane.b32.xlu0 %v1339_v36, %s1118_s18  ;;  %286 = vrot.lane.b32.xlu1 %v1342_v37, %s1118_s18  ;;  %s1035_s22 = sshll.u32 %s1121_s17, 4  ;;  %s1036_s22 = int_to_ptr.vmem [resolvable:$false] %s1035_s22 }
  0x44   : > { %v540_v39 = vsel %vm1309_vm3, 0.0, %v536_v35  ;;  %v547_v42 = vadd.f32 %v537_v25, %v515_v38  ;;  %v517_v44 = vsel %vm1316_vm4, 0.0, %v512_v40  ;;  %vm1355_vm5 = vcmp.ge.s32.totalorder %v197_v21, 15  ;;  %p1033_p11 = pnand %p1032_p8, %p1893_p9  ;;  %s1037_s23 = scalar_lea.vmem %s1036_s22, 2048 }
  0x45   : > { %v548_v43 = vadd.f32 %v540_v39, %v513_v28  ;;  %v549_v46 = vadd.f32 %v535_v41, %v517_v44  ;;  %v527_v48 = vrot.slane %v1339_v36, 1  ;;  %vm1360_vm6 = vcmp.lt.s32.totalorder %v204_v22, 1  ;;  %p1038_p6 = scmp.lt.s32.totalorder %s1817_s5, %s1036_s22  ;;  %p1039_p13 = scmp.lt.s32.totalorder %s1037_s23, %s1031_s16 }
  0x46   : > { %v555_v50 = vmul.f32 3.0, %v547_v42  ;;  %v511_v52 = vsel %vm466_vm1, %v501_v30, %v502_v45  ;;  %v503_v53 = vrot.slane %v1339_v36, 7  ;;  %v1375_v55 = vmul.f32 10.0, %v1272_v9  ;;  %p1034_p0 = pneg %p1033_p11 }
  0x47   : > { %v556_v51 = vmul.f32 3.0, %v548_v43  ;;  %v534_v56 = vsel %vm433_vm0, %v526_v31, %v527_v48  ;;  %v528_v57 = vrot.slane %v1342_v37, 1  ;;  %v211_v58 = vand.u32 15, %v1282_v13  ;;  %289 = vrot.lane.b32.xlu0 %v1372_v54, %s1118_s18  ;;  %292 = vrot.lane.b32.xlu1 %v1298_v19, %s1118_s18  ;;  %p1040_p2 = por %p1039_p13, %p1038_p6 }
  0x48   : > { %v557_v59 = vmul.f32 3.0, %v549_v46  ;;  %v1382_v60 = vmul.f32 10.0, %v1295_v18  ;;  %v542_v61 = vsel %vm1355_vm5, 0.0, %v534_v56  ;;  %v510_v62 = vsel %vm466_vm1, %v502_v45, %v503_v53 }
  0x49   : > { %v550_v63 = vadd.f32 %v542_v61, %v511_v52  ;;  %v1389_v2 = vmul.f32 10.0, %v1339_v36  ;;  %v519_v3 = vsel %vm1360_vm6, 0.0, %v510_v62  ;;  %v533_v4 = vsel %vm433_vm0, %v527_v48, %v528_v57  ;;  %p1041_p5 = pnand %p1040_p2, %p1034_p0 }
  0x4a   : > { %v1400_v5 = vadd.f32 %v555_v50, %v1327_v32  ;;  %v1403_v6 = vadd.f32 %v556_v51, %v1334_v34  ;;  %v551_v7 = vadd.f32 %v533_v4, %v519_v3  ;;  %v504_v12 = vrot.slane %v1342_v37, 7 }
  0x4b   : > { %v558_v13 = vmul.f32 3.0, %v550_v63  ;;  %vm1406_vm7 = vcmp.ge.s32.totalorder %v211_v58, 15  ;;  %v529_v16 = vrot.slane %v1372_v54, 1  ;;  %v218_v20 = vand.u32 15, %v1292_v17 }
  0x4c   : > { %v1413_v21 = vadd.f32 %v557_v59, %v1375_v55  ;;  %v509_v22 = vsel %vm466_vm1, %v503_v53, %v504_v12  ;;  %v505_v25 = vrot.slane %v1372_v54, 7  ;;  %v530_v27 = vrot.slane %v1298_v19, 1  ;;  %571 = vrot.lane.b32.xlu0 %v1400_v5, %s1118_s18  ;;  %574 = vrot.lane.b32.xlu1 %v1403_v6, %s1118_s18 }
  0x4d   : > { %v559_v28 = vmul.f32 3.0, %v551_v7  ;;  %v532_v30 = vsel %vm433_vm0, %v528_v57, %v529_v16  ;;  %vm1421_vm8 = vcmp.lt.s32.totalorder %v218_v20, 1  ;;  %v225_v17 = vand.u32 15, %v1302_v23 }
  0x4e   : > { %v1431_v33 = vadd.f32 %v558_v13, %v1382_v60  ;;  %v544_v35 = vsel %vm1406_vm7, 0.0, %v532_v30  ;;  %v508_v38 = vsel %vm466_vm1, %v504_v12, %v505_v25  ;;  %v531_v39 = vsel %vm433_vm0, %v529_v16, %v530_v27 }
  0x4f   : > { %v1440_v23 = vmul.f32 10.0, %v1342_v37  ;;  %v552_v40 = vadd.f32 %v544_v35, %v509_v22  ;;  %v521_v41 = vsel %vm1421_vm8, 0.0, %v508_v38  ;;  %vm1444_vm9 = vcmp.ge.s32.totalorder %v225_v17, 15 }
  0x50   : > { %v553_v43 = vadd.f32 %v531_v39, %v521_v41  ;;  %v507_v44 = vsel %vm466_vm1, %v505_v25, %v506_v24  ;;  %v538_v45 = vsel %vm433_vm0, %v530_v27, %v523_v15  ;;  %v1457_v48 = vmul.f32 10.0, %v1372_v54  ;;  %577 = vrot.lane.b32.xlu0 %v1413_v21, %s1118_s18  ;;  %580 = vrot.lane.b32.xlu1 %v1431_v33, %s1118_s18 }
  0x51   : > { %v560_v46 = vmul.f32 3.0, %v552_v40  ;;  %v546_v50 = vsel %vm1444_vm9, 0.0, %v538_v45  ;;  %v1466_v24 = vadd.f32 %v559_v28, %v1389_v2  ;;  %v1469_v52 = vmul.f32 10.0, %v1298_v19 }
  0x52   : > { %v561_v51 = vmul.f32 3.0, %v553_v43  ;;  %v554_v15 = vadd.f32 %v546_v50, %v507_v44  ;;  %vm787_vm13 = vcmask 130048  }
  0x53   : > { %v1472_v53 = vadd.f32 %v560_v46, %v1440_v23 }
  0x54   : > { %v562_v56 = vmul.f32 3.0, %v554_v15  ;;  %583 = vrot.lane.b32.xlu0 %v1466_v24, %s1118_s18  ;;  %v1479_v57 = vadd.f32 %v561_v51, %v1457_v48 }
  0x55   : > { %586 = vrot.lane.b32.xlu1 %v1472_v53, %s1118_s18 }
  0x56   : > { %v1482_v58 = vadd.f32 %v562_v56, %v1469_v52 }
  0x58   : > { %589 = vrot.lane.b32.xlu0 %v1479_v57, %s1118_s18 }
  0x59   : > { %592 = vrot.lane.b32.xlu1 %v1482_v58, %s1118_s18 }
  0xad   : > { %v272_v59 = vpop.permute.xlu0 %271  ;;  %v278_v61 = vpop.permute.xlu1 %277 }
  0xae   : > { %v273_v62 = vsel %vm270_vm10, %v272_v59, %v1269_v8  ;;  %v279_v63 = vsel %vm270_vm10, %v278_v61, %v1272_v9 }
  0xaf   : > { %295 = vrot.lane.b32.xlu0 %v273_v62, %s1118_s18 }
  0xb1   : > { %v275_v3 = vpop.permute.xlu0 %274  ;;  %v281_v4 = vpop.permute.xlu1 %280 }
  0xb2   : > { %v276_v7 = vsel %vm270_vm10, %v275_v3, %v1275_v10  ;;  %v282_v12 = vsel %vm270_vm10, %v281_v4, %v1295_v18 }
  0xb3   : > { %297 = vrot.lane.b32.xlu1 %v276_v7, %s1118_s18  ;;  %299 = vrot.lane.b32.xlu0 %v279_v63, %s1118_s18 }
  0xb5   : > { %v284_v13 = vpop.permute.xlu0 %283  ;;  %v287_v16 = vpop.permute.xlu1 %286 }
  0xb6   : > { %v285_v20 = vsel %vm270_vm10, %v284_v13, %v1339_v36  ;;  %v288_v22 = vsel %vm270_vm10, %v287_v16, %v1342_v37 }
  0xb7   : > { %301 = vrot.lane.b32.xlu1 %v282_v12, %s1118_s18  ;;  %303 = vrot.lane.b32.xlu0 %v285_v20, %s1118_s18 }
  0xb9   : > { %v290_v25 = vpop.permute.xlu0 %289  ;;  %v293_v27 = vpop.permute.xlu1 %292 }
  0xba   : > { %v291_v28 = vsel %vm270_vm10, %v290_v25, %v1372_v54  ;;  %v294_v30 = vsel %vm270_vm10, %v293_v27, %v1298_v19 }
  0xbb   : > { %305 = vrot.lane.b32.xlu1 %v288_v22, %s1118_s18  ;;  %307 = vrot.lane.b32.xlu0 %v291_v28, %s1118_s18 }
  0xbe   : > { %v572_v17 = vpop.permute.xlu0 %571  ;;  %v575_v35 = vpop.permute.xlu1 %574 }
  0xbf   : > { %v573_v38 = vsel %vm270_vm10, %v572_v17, %v1400_v5  ;;  %309 = vrot.lane.b32.xlu1 %v294_v30, %s1118_s18  ;;  %v576_v39 = vsel %vm270_vm10, %v575_v35, %v1403_v6 }
  0xc0   : > { %595 = vrot.lane.b32.xlu0 %v573_v38, %s1118_s18 }
  0xc2   : > { %v578_v40 = vpop.permute.xlu0 %577  ;;  %v581_v41 = vpop.permute.xlu1 %580 }
  0xc3   : > { %v579_v43 = vsel %vm270_vm10, %v578_v40, %v1413_v21  ;;  %597 = vrot.lane.b32.xlu1 %v576_v39, %s1118_s18  ;;  %v582_v44 = vsel %vm270_vm10, %v581_v41, %v1431_v33 }
  0xc4   : > { %599 = vrot.lane.b32.xlu0 %v579_v43, %s1118_s18 }
  0xc6   : > { %v584_v45 = vpop.permute.xlu0 %583 }
  0xc7   : > { %v587_v46 = vpop.permute.xlu1 %586  ;;  %v585_v50 = vsel %vm270_vm10, %v584_v45, %v1466_v24  ;;  %601 = vrot.lane.b32.xlu1 %v582_v44, %s1118_s18 }
  0xc8   : > { %603 = vrot.lane.b32.xlu0 %v585_v50, %s1118_s18  ;;  %v588_v51 = vsel %vm270_vm10, %v587_v46, %v1472_v53 }
  0xca   : > { %v590_v15 = vpop.permute.xlu0 %589 }
  0xcb   : > { %v593_v56 = vpop.permute.xlu1 %592  ;;  %v591_v59 = vsel %vm270_vm10, %v590_v15, %v1479_v57  ;;  %605 = vrot.lane.b32.xlu1 %v588_v51, %s1118_s18 }
  0xcc   : > { %607 = vrot.lane.b32.xlu0 %v591_v59, %s1118_s18  ;;  %v594_v61 = vsel %vm270_vm10, %v593_v56, %v1482_v58  ;;  %v1601_v56 = vand.u32 127, %v163_v0 }
  0xce   : > { %vm360_vm11 = vcmp.ge.s32.totalorder %v1601_v56, 15  ;;  %vm319_vm12 = vcmp.lt.s32.totalorder %v1601_v56, 1 }
  0xcf   : > { %609 = vrot.lane.b32.xlu1 %v594_v61, %s1118_s18 }
 0x121   : > { %v296_v62 = vpop.permute.xlu0 %295 }
 0x122   : > { %v311_v63 = vsel %vm270_vm10, %v296_v62, %v1269_v8 }
 0x123   : > { %328 = vrot.lane.b32.xlu0 %v311_v63, %s1119_s27 }
 0x125   : > { %v298_v3 = vpop.permute.xlu1 %297  ;;  %v300_v4 = vpop.permute.xlu0 %299 }
 0x126   : > { %v312_v7 = vsel %vm270_vm10, %v298_v3, %v1275_v10  ;;  %v313_v12 = vsel %vm270_vm10, %v300_v4, %v1272_v9 }
 0x127   : > { %330 = vrot.lane.b32.xlu1 %v312_v7, %s1119_s27  ;;  %332 = vrot.lane.b32.xlu0 %v313_v12, %s1119_s27 }
 0x129   : > { %v302_v13 = vpop.permute.xlu1 %301  ;;  %v304_v16 = vpop.permute.xlu0 %303 }
 0x12a   : > { %v314_v8 = vsel %vm270_vm10, %v302_v13, %v1295_v18  ;;  %v315_v20 = vsel %vm270_vm10, %v304_v16, %v1339_v36 }
 0x12b   : > { %334 = vrot.lane.b32.xlu1 %v314_v8, %s1119_s27  ;;  %336 = vrot.lane.b32.xlu0 %v315_v20, %s1119_s27 }
 0x12d   : > { %v306_v10 = vpop.permute.xlu1 %305  ;;  %v308_v22 = vpop.permute.xlu0 %307 }
 0x12e   : > { %v316_v9 = vsel %vm270_vm10, %v306_v10, %v1342_v37  ;;  %v317_v25 = vsel %vm270_vm10, %v308_v22, %v1372_v54 }
 0x12f   : > { %338 = vrot.lane.b32.xlu1 %v316_v9, %s1119_s27  ;;  %340 = vrot.lane.b32.xlu0 %v317_v25, %s1119_s27 }
 0x131   : > { %v310_v18 = vpop.permute.xlu1 %309 }
 0x132   : > { %v318_v36 = vsel %vm270_vm10, %v310_v18, %v1298_v19  ;;  %v596_v37 = vpop.permute.xlu0 %595 }
 0x133   : > { %342 = vrot.lane.b32.xlu1 %v318_v36, %s1119_s27  ;;  %361 = vrot.lane.b32.xlu0 %v311_v63, %s1120_s29  ;;  %v611_v19 = vsel %vm270_vm10, %v596_v37, %v1400_v5 }
 0x135   : > { %v598_v54 = vpop.permute.xlu1 %597 }
 0x136   : > { %v600_v27 = vpop.permute.xlu0 %599  ;;  %v612_v17 = vsel %vm270_vm10, %v598_v54, %v1403_v6 }
 0x137   : > { %363 = vrot.lane.b32.xlu1 %v312_v7, %s1120_s29  ;;  %365 = vrot.lane.b32.xlu0 %v313_v12, %s1120_s29  ;;  %v613_v35 = vsel %vm270_vm10, %v600_v27, %v1413_v21 }
 0x139   : > { %v602_v28 = vpop.permute.xlu1 %601 }
 0x13a   : > { %v604_v30 = vpop.permute.xlu0 %603  ;;  %v614_v5 = vsel %vm270_vm10, %v602_v28, %v1431_v33 }
 0x13b   : > { %367 = vrot.lane.b32.xlu1 %v314_v8, %s1120_s29  ;;  %369 = vrot.lane.b32.xlu0 %v315_v20, %s1120_s29  ;;  %v615_v39 = vsel %vm270_vm10, %v604_v30, %v1466_v24 }
 0x13d   : > { %v606_v38 = vpop.permute.xlu1 %605 }
 0x13e   : > { %v608_v40 = vpop.permute.xlu0 %607  ;;  %v616_v6 = vsel %vm270_vm10, %v606_v38, %v1472_v53 }
 0x13f   : > { %371 = vrot.lane.b32.xlu1 %v316_v9, %s1120_s29  ;;  %373 = vrot.lane.b32.xlu0 %v317_v25, %s1120_s29  ;;  %v617_v21 = vsel %vm270_vm10, %v608_v40, %v1479_v57 }
 0x141   : > { %v610_v41 = vpop.permute.xlu1 %609 }
 0x142   : > { %v618_v33 = vsel %vm270_vm10, %v610_v41, %v1482_v58 }
 0x143   : > { %375 = vrot.lane.b32.xlu1 %v318_v36, %s1120_s29  ;;  %627 = vrot.lane.b32.xlu0 %v611_v19, %s1120_s29 }
 0x147   : > { %629 = vrot.lane.b32.xlu1 %v612_v17, %s1120_s29  ;;  %631 = vrot.lane.b32.xlu0 %v613_v35, %s1120_s29 }
 0x14b   : > { %633 = vrot.lane.b32.xlu1 %v614_v5, %s1120_s29  ;;  %635 = vrot.lane.b32.xlu0 %v615_v39, %s1120_s29 }
 0x14f   : > { %637 = vrot.lane.b32.xlu1 %v616_v6, %s1120_s29  ;;  %639 = vrot.lane.b32.xlu0 %v617_v21, %s1120_s29 }
 0x153   : > { %641 = vrot.lane.b32.xlu1 %v618_v33, %s1120_s29  ;;  %659 = vrot.lane.b32.xlu0 %v611_v19, %s1119_s27 }
 0x157   : > { %661 = vrot.lane.b32.xlu1 %v612_v17, %s1119_s27  ;;  %663 = vrot.lane.b32.xlu0 %v613_v35, %s1119_s27 }
 0x15b   : > { %665 = vrot.lane.b32.xlu1 %v614_v5, %s1119_s27  ;;  %667 = vrot.lane.b32.xlu0 %v615_v39, %s1119_s27 }
 0x15f   : > { %669 = vrot.lane.b32.xlu1 %v616_v6, %s1119_s27  ;;  %671 = vrot.lane.b32.xlu0 %v617_v21, %s1119_s27 }
 0x163   : > { %673 = vrot.lane.b32.xlu1 %v618_v33, %s1119_s27 }
 0x195   : > { %v329_v24 = vpop.permute.xlu0 %328 }
 0x196   : > { %v352_v13 = vsel %vm319_vm12, 0.0, %v329_v24 }
 0x199   : > { %v331_v53 = vpop.permute.xlu1 %330  ;;  %v333_v57 = vpop.permute.xlu0 %332 }
 0x19a   : > { %v353_v3 = vsel %vm319_vm12, 0.0, %v331_v53  ;;  %v354_v4 = vsel %vm319_vm12, 0.0, %v333_v57 }
 0x19d   : > { %v335_v58 = vpop.permute.xlu1 %334  ;;  %v337_v43 = vpop.permute.xlu0 %336 }
 0x19e   : > { %v355_v9 = vsel %vm319_vm12, 0.0, %v335_v58  ;;  %v356_v36 = vsel %vm319_vm12, 0.0, %v337_v43 }
 0x1a1   : > { %v339_v44 = vpop.permute.xlu1 %338  ;;  %v341_v45 = vpop.permute.xlu0 %340 }
 0x1a2   : > { %v357_v17 = vsel %vm319_vm12, 0.0, %v339_v44  ;;  %v358_v53 = vsel %vm319_vm12, 0.0, %v341_v45 }
 0x1a5   : > { %v343_v46 = vpop.permute.xlu1 %342  ;;  %v362_v50 = vpop.permute.xlu0 %361 }
 0x1a6   : > { %v385_v0 = vsel %vm360_vm11, 0.0, %v362_v50  ;;  %v359_v35 = vsel %vm319_vm12, 0.0, %v343_v46 }
 0x1a7   : > { %v393_v20 = vadd.f32 %v385_v0, %v352_v13 }
 0x1a9   : > { %v364_v51 = vpop.permute.xlu1 %363  ;;  %v366_v15 = vpop.permute.xlu0 %365  ;;  %v401_v19 = vmul.f32 3.0, %v393_v20 }
 0x1aa   : > { %v386_v59 = vsel %vm360_vm11, 0.0, %v364_v51  ;;  %v387_v61 = vsel %vm360_vm11, 0.0, %v366_v15 }
 0x1ab   : > { %v394_v7 = vadd.f32 %v386_v59, %v353_v3  ;;  %v395_v12 = vadd.f32 %v387_v61, %v354_v4  ;;  %v1640_v57 = vadd.f32 %v1327_v32, %v401_v19 }
 0x1ad   : > { %v368_v62 = vpop.permute.xlu1 %367  ;;  %v370_v63 = vpop.permute.xlu0 %369  ;;  %v402_v25 = vmul.f32 3.0, %v394_v7  ;;  %v403_v18 = vmul.f32 3.0, %v395_v12  ;;  %v458_v45 = vrot.slane %v1640_v57, 7  ;;  %v425_v12 = vrot.slane %v1640_v57, 1 }
 0x1ae   : > { %v388_v10 = vsel %vm360_vm11, 0.0, %v368_v62  ;;  %v389_v22 = vsel %vm360_vm11, 0.0, %v370_v63 }
 0x1af   : > { %v396_v37 = vadd.f32 %v388_v10, %v355_v9  ;;  %v397_v28 = vadd.f32 %v389_v22, %v356_v36  ;;  %v418_v5 = vadd.f32 %v1334_v34, %v402_v25  ;;  %v419_v39 = vadd.f32 %v1375_v55, %v403_v18 }
 0x1b1   : > { %v372_v16 = vpop.permute.xlu1 %371  ;;  %v374_v8 = vpop.permute.xlu0 %373  ;;  %v404_v21 = vmul.f32 3.0, %v396_v37  ;;  %v405_v58 = vmul.f32 3.0, %v397_v28  ;;  %v426_v34 = vrot.slane %v418_v5, 1  ;;  %v427_v46 = vrot.slane %v419_v39, 1 }
 0x1b2   : > { %v390_v30 = vsel %vm360_vm11, 0.0, %v372_v16  ;;  %v391_v40 = vsel %vm360_vm11, 0.0, %v374_v8  ;;  %v459_v62 = vrot.slane %v418_v5, 7  ;;  %v460_v3 = vrot.slane %v419_v39, 7 }
 0x1b3   : > { %v398_v41 = vadd.f32 %v390_v30, %v357_v17  ;;  %v399_v44 = vadd.f32 %v391_v40, %v358_v53  ;;  %v420_v50 = vadd.f32 %v1382_v60, %v404_v21  ;;  %v1652_v32 = vadd.f32 %v1389_v2, %v405_v58 }
 0x1b4   : > { %v440_v9 = vsel %vm433_vm0, %v425_v12, %v426_v34  ;;  %v472_v11 = vsel %vm466_vm1, %v459_v62, %v460_v3 }
 0x1b5   : > { %v376_v54 = vpop.permute.xlu1 %375  ;;  %v628_v27 = vpop.permute.xlu0 %627  ;;  %v406_v51 = vmul.f32 3.0, %v398_v41  ;;  %v407_v63 = vmul.f32 3.0, %v399_v44  ;;  %v428_v4 = vrot.slane %v420_v50, 1  ;;  %v429_v13 = vrot.slane %v1652_v32, 1 }
 0x1b6   : > { %v392_v38 = vsel %vm360_vm11, 0.0, %v376_v54  ;;  %v461_v10 = vrot.slane %v420_v50, 7  ;;  %v462_v22 = vrot.slane %v1652_v32, 7  ;;  %v651_v37 = vsel %vm360_vm11, 0.0, %v628_v27 }
 0x1b7   : > { %v400_v6 = vadd.f32 %v392_v38, %v359_v35  ;;  %v1662_v0 = vadd.f32 %v1440_v23, %v406_v51  ;;  %v1673_v8 = vadd.f32 %v1457_v48, %v407_v63  ;;  %v473_v23 = vsel %vm466_vm1, %v458_v45, %v459_v62 }
 0x1b8   : > { %v438_v36 = vsel %vm433_vm0, %v427_v46, %v428_v4  ;;  %v437_v28 = vsel %vm433_vm0, %v428_v4, %v429_v13  ;;  %v485_v38 = vsel %vm1316_vm4, 0.0, %v472_v11  ;;  %v471_v27 = vsel %vm466_vm1, %v460_v3, %v461_v10 }
 0x1b9   : > { %v630_v33 = vpop.permute.xlu1 %629  ;;  %v632_v24 = vpop.permute.xlu0 %631  ;;  %v408_v43 = vmul.f32 3.0, %v400_v6  ;;  %v430_v48 = vrot.slane %v1662_v0, 1  ;;  %v463_v30 = vrot.slane %v1662_v0, 7  ;;  %v431_v17 = vrot.slane %v1673_v8, 1 }
 0x1ba   : > { %v464_v5 = vrot.slane %v1673_v8, 7  ;;  %v493_v39 = vsub.f32 %v438_v36, %v485_v38  ;;  %v470_v40 = vsel %vm466_vm1, %v461_v10, %v462_v22  ;;  %v453_v58 = vsel %vm1355_vm5, 0.0, %v437_v28 }
 0x1bb   : > { %v1643_v55 = vadd.f32 %v1469_v52, %v408_v43  ;;  %v439_v52 = vsel %vm433_vm0, %v426_v34, %v427_v46  ;;  %v436_v29 = vsel %vm433_vm0, %v429_v13, %v430_v48  ;;  %v652_v43 = vsel %vm360_vm11, 0.0, %v630_v33 }
 0x1bc   : > { %v451_v20 = vsel %vm1309_vm3, 0.0, %v439_v52  ;;  %v653_v44 = vsel %vm360_vm11, 0.0, %v632_v24  ;;  %v487_v47 = vsel %vm1360_vm6, 0.0, %v470_v40  ;;  %v701_v62 = vmul.f32 %v493_v39, %v493_v39 }
 0x1bd   : > { %v1646_v15 = vpop.permute.xlu1 %633  ;;  %v1648_v59 = vpop.permute.xlu0 %635  ;;  %v465_v61 = vrot.slane %v1643_v55, 7  ;;  %v492_v19 = vsub.f32 %v451_v20, %v473_v23  ;;  %v494_v63 = vsub.f32 %v453_v58, %v471_v27  ;;  %v495_v3 = vsub.f32 %v436_v29, %v487_v47 }
 0x1be   : > { %v432_v33 = vrot.slane %v1643_v55, 1  ;;  %v435_v49 = vsel %vm433_vm0, %v430_v48, %v431_v17  ;;  %v469_v8 = vsel %vm466_vm1, %v462_v22, %v463_v30  ;;  %v654_v20 = vsel %vm360_vm11, 0.0, %v1646_v15 }
 0x1bf   : > { %v474_v60 = vsel %vm466_vm1, %v465_v61, %v458_v45  ;;  %v700_v32 = vmul.f32 %v492_v19, %v492_v19  ;;  %v655_v23 = vsel %vm360_vm11, 0.0, %v1648_v59  ;;  %v468_v10 = vsel %vm466_vm1, %v463_v30, %v464_v5 }
 0x1c0   : > { %v483_v16 = vsel %vm1277_vm2, 0.0, %v474_v60  ;;  %v455_v22 = vsel %vm1406_vm7, 0.0, %v435_v49  ;;  %v434_v15 = vsel %vm433_vm0, %v431_v17, %v432_v33  ;;  %v441_v59 = vsel %vm433_vm0, %v432_v33, %v425_v12 }
 0x1c1   : > { %v1664_v7 = vpop.permute.xlu1 %637  ;;  %v1666_v2 = vpop.permute.xlu0 %639  ;;  %v491_v26 = vsub.f32 %v440_v9, %v483_v16  ;;  %v489_v38 = vsel %vm1421_vm8, 0.0, %v468_v10  ;;  %v496_v57 = vsub.f32 %v455_v22, %v469_v8  ;;  %v467_v39 = vsel %vm466_vm1, %v464_v5, %v465_v61 }
 0x1c2   : > { %v497_v12 = vsub.f32 %v434_v15, %v489_v38  ;;  %v656_v27 = vsel %vm360_vm11, 0.0, %v1664_v7  ;;  %v657_v31 = vsel %vm360_vm11, 0.0, %v1666_v2 }
 0x1c3   : > { %v699_v6 = vmul.f32 %v491_v26, %v491_v26 }
 0x1c5   : > { %v1687_v25 = vpop.permute.xlu1 %641  ;;  %v660_v18 = vpop.permute.xlu0 %659 }
 0x1c6   : > { %v683_v54 = vsel %vm319_vm12, 0.0, %v660_v18  ;;  %v702_v18 = vmul.f32 %v494_v63, %v494_v63  ;;  %v658_v1 = vsel %vm360_vm11, 0.0, %v1687_v25 }
 0x1c7   : > { %v691_v35 = vsub.f32 %v651_v37, %v683_v54 }
 0x1c9   : > { %v707_v21 = vmul.f32 %v691_v35, %v691_v35  ;;  %v662_v41 = vpop.permute.xlu1 %661  ;;  %v664_v53 = vpop.permute.xlu0 %663  ;;  %v703_v35 = vmul.f32 %v495_v3, %v495_v3 }
 0x1ca   : > { %v684_v34 = vsel %vm319_vm12, 0.0, %v662_v41  ;;  %v685_v46 = vsel %vm319_vm12, 0.0, %v664_v53 }
 0x1cb   : > { %v715_v50 = vadd.f32 %v707_v21, %v699_v6  ;;  %v692_v51 = vsub.f32 %v652_v43, %v684_v34  ;;  %v693_v45 = vsub.f32 %v653_v44, %v685_v46  ;;  %v457_v6 = vsel %vm1444_vm9, 0.0, %v441_v59 }
 0x1cc   : > { %v498_v43 = vsub.f32 %v457_v6, %v467_v39  ;;  %v704_v34 = vmul.f32 %v496_v57, %v496_v57  ;;  %v705_v46 = vmul.f32 %v497_v12, %v497_v12 }
 0x1cd   : > { %v1721_v60 = vadd.f32 1e-06, %v715_v50  ;;  %v708_v24 = vmul.f32 %v692_v51, %v692_v51  ;;  %v709_v52 = vmul.f32 %v693_v45, %v693_v45  ;;  %v666_v4 = vpop.permute.xlu1 %665  ;;  %v668_v0 = vpop.permute.xlu0 %667 }
 0x1ce   : > { %v686_v13 = vsel %vm319_vm12, 0.0, %v666_v4  ;;  %v687_v16 = vsel %vm319_vm12, 0.0, %v668_v0  ;;  %v706_v47 = vmul.f32 %v498_v43, %v498_v43 }
 0x1cf   : > { %985 = vrsqrt.f32 %v1721_v60  ;;  %v716_v9 = vadd.f32 %v708_v24, %v700_v32  ;;  %v717_v11 = vadd.f32 %v709_v52, %v701_v62  ;;  %v694_v26 = vsub.f32 %v654_v20, %v686_v13 }
 0x1d0   : > { %v695_v48 = vsub.f32 %v655_v23, %v687_v16  ;;  %vm733_vm14 = vcmp.eq.f32.partialorder %v1721_v60, inf  ;;  %v736_v25 = vand.u32 2147483648, %v1721_v60  ;;  %vm735_vm15 = vcmp.eq.f32.partialorder %v1721_v60, 0.0 }
 0x1d1   : > { %v670_v36 = vpop.permute.xlu1 %669  ;;  %v672_v37 = vpop.permute.xlu0 %671  ;;  %v1748_v54 = vadd.f32 1e-06, %v716_v9  ;;  %v1750_v19 = vadd.f32 1e-06, %v717_v11  ;;  %v710_v28 = vmul.f32 %v694_v26, %v694_v26 }
 0x1d2   : > { %v711_v30 = vmul.f32 %v695_v48, %v695_v48  ;;  %v688_v14 = vsel %vm319_vm12, 0.0, %v670_v36  ;;  %v689_v17 = vsel %vm319_vm12, 0.0, %v672_v37 }
 0x1d3   : > { %987 = vrsqrt.f32 %v1748_v54  ;;  %v718_v21 = vadd.f32 %v710_v28, %v702_v18  ;;  %v696_v55 = vsub.f32 %v656_v27, %v688_v14  ;;  %v697_v53 = vsub.f32 %v657_v31, %v689_v17 }
 0x1d4   : > { %989 = vrsqrt.f32 %v1750_v19  ;;  %v719_v41 = vadd.f32 %v711_v30, %v703_v35  ;;  %vm740_vm0 = vcmp.eq.f32.partialorder %v1748_v54, inf  ;;  %vm742_vm1 = vcmp.eq.f32.partialorder %v1748_v54, 0.0 }
 0x1d5   : > { %v674_v40 = vpop.permute.xlu1 %673  ;;  %v726_v7 = vadd.f32 1e-06, %v718_v21  ;;  %v712_v2 = vmul.f32 %v696_v55, %v696_v55  ;;  %v713_v58 = vmul.f32 %v697_v53, %v697_v53  ;;  %v743_v52 = vand.u32 2147483648, %v1748_v54 }
 0x1d6   : > { %v690_v61 = vsel %vm319_vm12, 0.0, %v674_v40  ;;  %v727_v5 = vadd.f32 1e-06, %v719_v41  ;;  %vm747_vm2 = vcmp.eq.f32.partialorder %v1750_v19, inf  ;;  %v750_v13 = vand.u32 2147483648, %v1750_v19 }
 0x1d7   : > { %v698_v44 = vsub.f32 %v658_v1, %v690_v61  ;;  %991 = vrsqrt.f32 %v726_v7  ;;  %v720_v50 = vadd.f32 %v712_v2, %v704_v34  ;;  %v721_v51 = vadd.f32 %v713_v58, %v705_v46 }
 0x1d8   : > { %993 = vrsqrt.f32 %v727_v5  ;;  %vm749_vm3 = vcmp.eq.f32.partialorder %v1750_v19, 0.0  ;;  %vm754_vm4 = vcmp.eq.f32.partialorder %v726_v7, inf  ;;  %v757_v11 = vand.u32 2147483648, %v726_v7 }
 0x1d9   : > { %v986_v29 = vpop.eup %985  ;;  %v714_v32 = vmul.f32 %v698_v44, %v698_v44  ;;  %v728_v63 = vadd.f32 1e-06, %v720_v50  ;;  %v729_v3 = vadd.f32 1e-06, %v721_v51  ;;  %vm756_vm5 = vcmp.eq.f32.partialorder %v726_v7, 0.0 }
 0x1da   : > { %v732_v42 = vmul.f32 %v986_v29, %v1721_v60  ;;  %vm761_vm6 = vcmp.eq.f32.partialorder %v727_v5, inf  ;;  %v764_v18 = vand.u32 2147483648, %v727_v5  ;;  %vm763_vm7 = vcmp.eq.f32.partialorder %v727_v5, 0.0 }
 0x1db   : > { %995 = vrsqrt.f32 %v728_v63  ;;  %vm768_vm8 = vcmp.eq.f32.partialorder %v728_v63, inf  ;;  %vm770_vm9 = vcmp.eq.f32.partialorder %v728_v63, 0.0  ;;  %vm775_vm10 = vcmp.eq.f32.partialorder %v729_v3, inf }
 0x1dc   : > { %v734_v56 = vsel %vm733_vm14, %v1721_v60, %v732_v42  ;;  %v722_v60 = vadd.f32 %v714_v32, %v706_v47  ;;  %997 = vrsqrt.f32 %v729_v3  ;;  %v778_v35 = vand.u32 2147483648, %v729_v3 }
 0x1dd   : > { %v737_v45 = vsel %vm735_vm15, %v736_v25, %v734_v56  ;;  %v988_v62 = vpop.eup %987  ;;  %vm777_vm11 = vcmp.eq.f32.partialorder %v729_v3, 0.0 }
 0x1de   : > { %788 = vst.msk [vmem:[%s1784_s30] sm:$0xff] %vm787_vm13, %v737_v45  ;;  %v990_v33 = vpop.eup %989  ;;  %v739_v24 = vmul.f32 %v988_v62, %v1748_v54  ;;  %v730_v20 = vadd.f32 1e-06, %v722_v60 }
 0x1df   : > { %v746_v4 = vmul.f32 %v990_v33, %v1750_v19 }
 0x1e0   : > { %v741_v0 = vsel %vm740_vm0, %v1748_v54, %v739_v24  ;;  %999 = vrsqrt.f32 %v730_v20  ;;  %vm782_vm12 = vcmp.eq.f32.partialorder %v730_v20, inf  ;;  %v785_v39 = vand.u32 2147483648, %v730_v20 }
 0x1e1   : > { %v744_v16 = vsel %vm742_vm1, %v743_v52, %v741_v0  ;;  %v748_v49 = vsel %vm747_vm2, %v1750_v19, %v746_v4  ;;  %v992_v23 = vpop.eup %991  ;;  %v771_v19 = vand.u32 2147483648, %v728_v63  ;;  %vm784_vm14 = vcmp.eq.f32.partialorder %v730_v20, 0.0 }
 0x1e2   : > { %789 = vst.msk [vmem:[%s1784_s30 + $0x8] sm:$0xff] %vm787_vm13, %v744_v16  ;;  %v751_v8 = vsel %vm749_vm3, %v750_v13, %v748_v49  ;;  %v994_v10 = vpop.eup %993  ;;  %v753_v9 = vmul.f32 %v992_v23, %v726_v7 }
 0x1e3   : > { %790 = vst.msk [vmem:[%s1784_s30 + $0x10] sm:$0xff] %vm787_vm13, %v751_v8  ;;  %v760_v26 = vmul.f32 %v994_v10, %v727_v5 }
 0x1e4   : > { %v755_v48 = vsel %vm754_vm4, %v726_v7, %v753_v9 }
 0x1e5   : > { %v758_v36 = vsel %vm756_vm5, %v757_v11, %v755_v48  ;;  %v762_v22 = vsel %vm761_vm6, %v727_v5, %v760_v26  ;;  %v996_v37 = vpop.eup %995 }
 0x1e6   : > { %791 = vst.msk [vmem:[%s1784_s30 + $0x18] sm:$0xff] %vm787_vm13, %v758_v36  ;;  %v765_v15 = vsel %vm763_vm7, %v764_v18, %v762_v22  ;;  %v998_v59 = vpop.eup %997  ;;  %v767_v54 = vmul.f32 %v996_v37, %v728_v63 }
 0x1e7   : > { %792 = vst.msk [vmem:[%s1784_s30 + $0x20] sm:$0xff] %vm787_vm13, %v765_v15  ;;  %v774_v28 = vmul.f32 %v998_v59, %v729_v3 }
 0x1e8   : > { %v769_v30 = vsel %vm768_vm8, %v728_v63, %v767_v54 }
 0x1e9   : > { %v772_v14 = vsel %vm770_vm9, %v771_v19, %v769_v30  ;;  %v776_v38 = vsel %vm775_vm10, %v729_v3, %v774_v28 }
 0x1ea   : > { %v1000_v17 = vpop.eup %999  ;;  %793 = vst.msk [vmem:[%s1784_s30 + $0x28] sm:$0xff] %vm787_vm13, %v772_v14  ;;  %v779_v57 = vsel %vm777_vm11, %v778_v35, %v776_v38 }
 0x1eb   : > { %794 = vst.msk [vmem:[%s1784_s30 + $0x30] sm:$0xff] %vm787_vm13, %v779_v57  ;;  %v781_v12 = vmul.f32 %v1000_v17, %v730_v20 }
 0x1ed   : > { %v783_v27 = vsel %vm782_vm12, %v730_v20, %v781_v12 }
 0x1ee   : > { %v786_v31 = vsel %vm784_vm14, %v785_v39, %v783_v27 }
 0x1ef   : > { %795 = vst.msk [vmem:[%s1784_s30 + $0x38] sm:$0xff] %vm787_vm13, %v786_v31 }
 0x1f0   : > { %1044 = shalt.err (!%p1041_p5)
}
 0x1f1   : > { %s1045_s24 = scalar_lea.hbm %s1815_s15, 1024  ;;  %s1049_s3 = scalar_lea.hbm %s1869_s1, 2048 }
 0x1f2   : > { %p1046_p4 = scmp.ne.s32.totalorder %s1815_s15, %s1045_s24  ;;  %p1050_p12 = scmp.lt.u32.totalorder %s1815_s15, %s1869_s1 }
 0x1f3   : > { %p1051_p1 = scmp.lt.u32.totalorder %s1049_s3, %s1045_s24  ;;  %p1053_p8 = scmp.lt.u32.totalorder %s1045_s24, %s1815_s15 }
 0x1f4   : > { %p1047_p7 = pnand %p1046_p4, %p1893_p9 }
 0x1f5   : > { %p1052_p3 = por %p1051_p1, %p1050_p12 }
 0x1f6   : > { %p1048_p10 = pneg %p1047_p7 }
 0x1f7   : > { %p1054_p11 = por %p1053_p8, %p1052_p3 }
 0x1f9   : > { %p1055_p0 = pnand %p1054_p11, %p1048_p10 }
 0x1fb   : > { %1058 = shalt.err (!%p1055_p0)
}
 0x1fc   : > { %s1122_s27 = smov 128   ;;  %s1123_s29 = smov 8  }
 0x1fd   : > { %918 = dma.vmem_to_hbm [thread:$0]  (%p1893_p9), %s1817_s5, 1024, %s1815_s15, %s797_s9, %s1122_s27, %s1122_s27, %s1123_s29  }
 0x1fe PF: > { %s827_s30 = sand.u32 1, %s1093_s6   ;;  %p1894_p6 = scmp.ne.s32.totalorder %s1874_s21, 0 }
 0x1ff   : > { %p1895_p13 = scmp.ge.s32.totalorder %s1113_s11, 2  ;;  %s828_s2 = scalar_lea.sflag [#allocation4], %s827_s30 }
 0x201   : > { %p925_p2 = pnand %p1895_p13, %p1894_p6 }
 0x203   : > { %1088 = dma.done.wait (!%p925_p2), %s828_s2, 1024  }
 0x204   : > { %1090 = vsyncadd (!%p925_p2), %s828_s2, 4294966272  ;;  %s17_s11 = sadd.s32 1, %s1113_s11   ;;  %s1896_s6 = smov %s1097_s7 }
 0x205   : > { %p14_p5 = scmp.ge.s32.totalorder %s17_s11, 4   ;;  %s1897_s7 = smov %s1101_s8 }
 0x206   : > { %s1898_s8 = smov %s1190_s20  ;;  %s1899_s9 = smov %s1109_s10 }
 0x207   : > { %s1900_s10 = smov %s1902_s14  ;;  %16 = sbr.rel (!%p14_p5) target bundleno = 6 (0x6), region = 69 }
 0x20e   :  { %833 = vsyncpa [#allocation3], 1 }
 0x20f   :  { %835 = vsyncpa [#allocation3 + $0x1], 1 }
 0x210   :  { %836 = vsyncpa [#allocation4], 1 }
 0x211   :  { %838 = vsyncpa [#allocation4 + $0x1], 1 }

</bundles_post_ra>
